<compile_context>
chip_gen: v7x
topology: tpu7x:2x2x1
jax: 0.10.0
libtpu: 0.0.40
codegen_flags: <defaults>
</compile_context>

<pallas_src>
import functools

import jax
import jax.numpy as jnp
from jax.experimental import pallas as pl
from jax.experimental.pallas import tpu as pltpu

N_EVENT_CLASSES = 28


def _supv_localize_kernel(x_ref, wcls_ref, wevt_ref, bcls_ref, bevt_ref,
                          logits_ref, scores_ref, max_sc, *, seq_len, tile_t):
    t = pl.program_id(0)

    @pl.when(t == 0)
    def _init():
        max_sc[...] = jnp.full_like(max_sc, -jnp.inf)

    x = x_ref[...]                                           # [TT, B, D] native dtype
    w_row = wcls_ref[...].astype(x.dtype)                    # [1, D]

    # Frame-level classifier Linear(D, 1): VPU multiply + f32 lane reduction over D.
    lg = jnp.sum(x * w_row[None, :, :], axis=-1, dtype=jnp.float32)   # [TT, B]
    # Store lane-dense: [B, TT] so T sits on the 128-lane axis (unmasked vst).
    logits_ref[...] = lg.T + bcls_ref[0]

    # Running max over the sequence axis, carried across grid steps.
    if seq_len % tile_t != 0:
        # Ragged tail: mask out-of-bounds rows with -inf before the max.
        row = jax.lax.broadcasted_iota(jnp.int32, x.shape, 0)
        valid = (t * tile_t + row) < seq_len
        x = jnp.where(valid, x, jnp.full_like(x, -jnp.inf))
    max_sc[...] = jnp.maximum(max_sc[...], jnp.max(x, axis=0))

    @pl.when(t == pl.num_programs(0) - 1)
    def _finalize():
        # Event classifier: [B, D] x [D, 28] on the MXU, f32 accumulation.
        sc = jnp.dot(max_sc[...], wevt_ref[...].astype(max_sc.dtype),
                     preferred_element_type=jnp.float32)
        scores_ref[...] = sc + bevt_ref[...].astype(jnp.float32)


def _round_up(x, m):
    return ((x + m - 1) // m) * m


def _pick_tile_t(T, B, D, itemsize, budget_bytes=12 << 20):
    """Pick tile_t from the *padded* per-buffer VMEM footprint of one [TT, B, D] tile.

    Accounts for (sublane, 128) layout padding; the x2 double-buffering of the
    pipeline is covered by budget_bytes being ~1/4 of the vmem limit.
    Returns either T (single step) or a multiple of 128 (keeps the lane-dense
    [B, tile_t] output block legal when tile_t < T).
    """
    sublane = max(8, 32 // max(1, itemsize))      # 8 for f32, 16 for bf16, 32 for int8
    b_pad = _round_up(B, sublane)
    d_pad = _round_up(D, 128)
    bytes_per_row = b_pad * d_pad * itemsize
    max_tt = max(1, budget_bytes // bytes_per_row)
    if T <= max_tt:
        return T
    return max(128, (max_tt // 128) * 128)


def supv_localize_module(fused_content, w_cls, b_cls, w_evt, b_evt, *, tile_t=None):
    """fused_content: [T, B, D]; w_cls: [D, 1]; b_cls: [1]; w_evt: [D, C]; b_evt: [C]."""
    T, B, D = fused_content.shape
    n_cls = w_evt.shape[-1]

    if tile_t is None:
        tile_t = _pick_tile_t(T, B, D, fused_content.dtype.itemsize)
    assert tile_t == T or tile_t % 128 == 0, \
        "tile_t must equal T or be a multiple of 128 (lane-dense output block)"
    num_tiles = pl.cdiv(T, tile_t)

    w_row = w_cls.reshape(1, D)                              # [1, D]
    bc = jnp.asarray(b_cls, jnp.float32).reshape(1)          # SMEM scalar
    be = jnp.asarray(b_evt, jnp.float32).reshape(1, n_cls)   # [1, C]

    flops = 2 * T * B * D + 2 * B * D * n_cls
    bytes_accessed = (
        fused_content.size * fused_content.dtype.itemsize
        + (w_row.size + w_evt.size) * w_evt.dtype.itemsize
        + 4 * (T * B + B * n_cls + 1 + n_cls)
    )

    kernel = functools.partial(_supv_localize_kernel, seq_len=T, tile_t=tile_t)

    logits_bt, scores = pl.pallas_call(
        kernel,
        out_shape=(
            jax.ShapeDtypeStruct((B, T), jnp.float32),        # lane-dense logits
            jax.ShapeDtypeStruct((B, n_cls), jnp.float32),
        ),
        grid=(num_tiles,),
        in_specs=[
            pl.BlockSpec((tile_t, B, D), lambda t: (t, 0, 0)),       # x tile
            pl.BlockSpec((1, D), lambda t: (0, 0)),                  # classifier row
            pl.BlockSpec((D, n_cls), lambda t: (0, 0)),              # event weights
            pl.BlockSpec(memory_space=pltpu.MemorySpace.SMEM),       # classifier bias
            pl.BlockSpec((1, n_cls), lambda t: (0, 0)),              # event bias
        ],
        out_specs=(
            pl.BlockSpec((B, tile_t), lambda t: (0, t)),             # per-tile logits
            pl.BlockSpec((B, n_cls), lambda t: (0, 0)),              # resident scores
        ),
        scratch_shapes=[pltpu.VMEM((B, D), fused_content.dtype)],    # running max
        compiler_params=pltpu.CompilerParams(
            dimension_semantics=("arbitrary",),
            vmem_limit_bytes=48 * 1024 * 1024,
        ),
        cost_estimate=pl.CostEstimate(
            flops=flops, transcendentals=0, bytes_accessed=bytes_accessed),
    )(fused_content, w_row, w_evt, bc, be)

    # Free layout plumbing in the wrapper: restore [T, B, 1].
    logits = jnp.transpose(logits_bt)[..., None]
    return logits, scores


def _reference(fused_content, w_cls, b_cls, w_evt, b_evt):
    xmax = jnp.max(jnp.transpose(fused_content, (1, 0, 2)), axis=1)       # [B, D]
    logits = jnp.einsum("tbd,do->tbo", fused_content, w_cls) + b_cls      # [T, B, 1]
    scores = xmax @ w_evt + b_evt                                         # [B, 28]
    return logits, scores


def _run_case(key, T, B, D, tile_t=None):
    k_x, k_wc, k_bc, k_we, k_be = jax.random.split(key, 5)
    fused_content = jax.random.normal(k_x, (T, B, D), dtype=jnp.float32)
    w_cls = jax.random.normal(k_wc, (D, 1), dtype=jnp.float32) * 0.1
    b_cls = jax.random.normal(k_bc, (1,), dtype=jnp.float32) * 0.1
    w_evt = jax.random.normal(k_we, (D, N_EVENT_CLASSES), dtype=jnp.float32) * 0.1
    b_evt = jax.random.normal(k_be, (N_EVENT_CLASSES,), dtype=jnp.float32) * 0.1

    logits, class_scores = supv_localize_module(
        fused_content, w_cls, b_cls, w_evt, b_evt, tile_t=tile_t)
    jax.block_until_ready((logits, class_scores))

    ref_logits, ref_scores = _reference(fused_content, w_cls, b_cls, w_evt, b_evt)
    assert logits.shape == (T, B, 1)
    assert class_scores.shape == (B, N_EVENT_CLASSES)
    assert jnp.allclose(logits, ref_logits, atol=1e-5, rtol=1e-5)
    assert jnp.allclose(class_scores, ref_scores, atol=1e-5, rtol=1e-5)


if __name__ == "__main__":
    key = jax.random.PRNGKey(0)
    k0, k1, k2 = jax.random.split(key, 3)

    # Main case (module-scale shapes): seq=8, batch=2, d_model=32. Single grid step.
    _run_case(k0, T=8, B=2, D=32)

    # Multi-step carried-max path: T=256 with tile_t=128 (2 grid steps).
    _run_case(k1, T=256, B=2, D=32, tile_t=128)

    # Ragged tail path: T=300 with tile_t=128 (3 grid steps, masked last tile).
    _run_case(k2, T=300, B=2, D=32, tile_t=128)

    print("KERNEL_OK")
</pallas_src>

<mosaic_0001>
module attributes {stable_mosaic.version = 11 : i64} {
  func.func @_supv_localize_kernel(%arg0: i32, %arg1: memref<8x2x32xf32, #tpu.memory_space<vmem>>, %arg2: memref<1x32xf32, #tpu.memory_space<vmem>>, %arg3: memref<32x28xf32, #tpu.memory_space<vmem>>, %arg4: memref<1xf32, #tpu.memory_space<smem>>, %arg5: memref<1x28xf32, #tpu.memory_space<vmem>>, %arg6: memref<2x8xf32, #tpu.memory_space<vmem>>, %arg7: memref<2x28xf32, #tpu.memory_space<vmem>>, %arg8: memref<2x32xf32, #tpu.memory_space<vmem>>) attributes {dimension_semantics = [#tpu.dimension_semantics<arbitrary>], iteration_bounds = array<i64: 1>, scalar_prefetch = 0 : i64, scratch_operands = 1 : i64, tpu.core_type = #tpu.core_type<tc>, window_params = [{transform_indices = @transform_0, window_bounds = array<i64: 8, 2, 32>}, {pipeline_mode = #tpu.pipeline_mode<synchronous>, transform_indices = @transform_1, window_bounds = array<i64: 1, 32>}, {pipeline_mode = #tpu.pipeline_mode<synchronous>, transform_indices = @transform_2, window_bounds = array<i64: 32, 28>}, {transform_indices = @transform_3, window_bounds = array<i64: 1>}, {pipeline_mode = #tpu.pipeline_mode<synchronous>, transform_indices = @transform_4, window_bounds = array<i64: 1, 28>}, {transform_indices = @transform_5, window_bounds = array<i64: 2, 8>}, {pipeline_mode = #tpu.pipeline_mode<synchronous>, transform_indices = @transform_6, window_bounds = array<i64: 2, 28>}]} {
    %c0_i32 = arith.constant 0 : i32
    %0 = arith.cmpi eq, %arg0, %c0_i32 : i32
    %1 = arith.extui %0 : i1 to i32
    %c0_i32_0 = arith.constant 0 : i32
    %2 = arith.cmpi ne, %1, %c0_i32_0 : i32
    scf.if %2 {
      %cst_15 = arith.constant 0xFF800000 : f32
      %21 = vector.broadcast %cst_15 : f32 to vector<2x32xf32>
      %c0_16 = arith.constant 0 : index
      %c0_17 = arith.constant 0 : index
      %22 = vector.load %arg8[%c0_16, %c0_17] : memref<2x32xf32, #tpu.memory_space<vmem>>, vector<2x32xf32>
      tpu.vector_store %arg8[%c0_16, %c0_17], %21 {strides = array<i32>} : memref<2x32xf32, #tpu.memory_space<vmem>>, vector<2x32xf32>,
    } else {
    }
    %c0 = arith.constant 0 : index
    %c0_1 = arith.constant 0 : index
    %c0_2 = arith.constant 0 : index
    %3 = vector.load %arg1[%c0, %c0_1, %c0_2] : memref<8x2x32xf32, #tpu.memory_space<vmem>>, vector<8x2x32xf32>
    %c0_3 = arith.constant 0 : index
    %c0_4 = arith.constant 0 : index
    %4 = vector.load %arg2[%c0_3, %c0_4] : memref<1x32xf32, #tpu.memory_space<vmem>>, vector<1x32xf32>
    %5 = vector.shape_cast %4 : vector<1x32xf32> to vector<1x1x32xf32>
    %6 = vector.broadcast %5 : vector<1x1x32xf32> to vector<8x2x32xf32>
    %7 = arith.mulf %3, %6 : vector<8x2x32xf32>
    %cst = arith.constant dense<0.000000e+00> : vector<8x2xf32>
    %8 = vector.multi_reduction <add>, %7, %cst [2] : vector<8x2x32xf32> to vector<8x2xf32>
    %9 = tpu.transpose %8, [1, 0] : vector<8x2xf32> -> vector<2x8xf32>
    %c0_5 = arith.constant 0 : index
    %10 = memref.load %arg4[%c0_5] : memref<1xf32, #tpu.memory_space<smem>>
    %11 = vector.broadcast %10 : f32 to vector<2x8xf32>
    %12 = arith.addf %9, %11 : vector<2x8xf32>
    %c0_6 = arith.constant 0 : index
    %c0_7 = arith.constant 0 : index
    %13 = vector.load %arg6[%c0_6, %c0_7] : memref<2x8xf32, #tpu.memory_space<vmem>>, vector<2x8xf32>
    tpu.vector_store %arg6[%c0_6, %c0_7], %12 {strides = array<i32>} : memref<2x8xf32, #tpu.memory_space<vmem>>, vector<2x8xf32>,
    %c0_8 = arith.constant 0 : index
    %c0_9 = arith.constant 0 : index
    %14 = vector.load %arg8[%c0_8, %c0_9] : memref<2x32xf32, #tpu.memory_space<vmem>>, vector<2x32xf32>
    %cst_10 = arith.constant dense<0xFF800000> : vector<2x32xf32>
    %15 = vector.multi_reduction <maximumf>, %3, %cst_10 [0] : vector<8x2x32xf32> to vector<2x32xf32>
    %16 = arith.maximumf %14, %15 : vector<2x32xf32>
    %c0_11 = arith.constant 0 : index
    %c0_12 = arith.constant 0 : index
    %17 = vector.load %arg8[%c0_11, %c0_12] : memref<2x32xf32, #tpu.memory_space<vmem>>, vector<2x32xf32>
    tpu.vector_store %arg8[%c0_11, %c0_12], %16 {strides = array<i32>} : memref<2x32xf32, #tpu.memory_space<vmem>>, vector<2x32xf32>,
    %c0_i32_13 = arith.constant 0 : i32
    %18 = arith.cmpi eq, %arg0, %c0_i32_13 : i32
    %19 = arith.extui %18 : i1 to i32
    %c0_i32_14 = arith.constant 0 : i32
    %20 = arith.cmpi ne, %19, %c0_i32_14 : i32
    scf.if %20 {
      %c0_15 = arith.constant 0 : index
      %c0_16 = arith.constant 0 : index
      %21 = vector.load %arg8[%c0_15, %c0_16] : memref<2x32xf32, #tpu.memory_space<vmem>>, vector<2x32xf32>
      %c0_17 = arith.constant 0 : index
      %c0_18 = arith.constant 0 : index
      %22 = vector.load %arg3[%c0_17, %c0_18] : memref<32x28xf32, #tpu.memory_space<vmem>>, vector<32x28xf32>
      %cst_19 = arith.constant dense<0.000000e+00> : vector<2x28xf32>
      %23 = tpu.matmul %21, %22, %cst_19 {dimension_numbers = #tpu.dot_dimension_numbers<[1], [0], [0], [1], [0, 0, 1, 1], [], []>} : vector<2x32xf32>, vector<32x28xf32>, vector<2x28xf32> -> vector<2x28xf32>
      %c0_20 = arith.constant 0 : index
      %c0_21 = arith.constant 0 : index
      %24 = vector.load %arg5[%c0_20, %c0_21] : memref<1x28xf32, #tpu.memory_space<vmem>>, vector<1x28xf32>
      %25 = vector.broadcast %24 : vector<1x28xf32> to vector<2x28xf32>
      %26 = arith.addf %23, %25 : vector<2x28xf32>
      %c0_22 = arith.constant 0 : index
      %c0_23 = arith.constant 0 : index
      %27 = vector.load %arg7[%c0_22, %c0_23] : memref<2x28xf32, #tpu.memory_space<vmem>>, vector<2x28xf32>
      tpu.vector_store %arg7[%c0_22, %c0_23], %26 {strides = array<i32>} : memref<2x28xf32, #tpu.memory_space<vmem>>, vector<2x28xf32>,
    } else {
    }
    return
  }
  func.func @transform_0(%arg0: i32) -> (i32, i32, i32) {
    %c0_i32 = arith.constant 0 : i32
    %c0_i32_0 = arith.constant 0 : i32
    %c0_i32_1 = arith.constant 0 : i32
    return %arg0, %c0_i32, %c0_i32_0 : i32, i32, i32
  }
  func.func @transform_1(%arg0: i32) -> (i32, i32) {
    %c0_i32 = arith.constant 0 : i32
    %c0_i32_0 = arith.constant 0 : i32
    %c0_i32_1 = arith.constant 0 : i32
    return %c0_i32, %c0_i32_0 : i32, i32
  }
  func.func @transform_2(%arg0: i32) -> (i32, i32) {
    %c0_i32 = arith.constant 0 : i32
    %c0_i32_0 = arith.constant 0 : i32
    %c0_i32_1 = arith.constant 0 : i32
    return %c0_i32, %c0_i32_0 : i32, i32
  }
  func.func @transform_3(%arg0: i32) -> i32 {
    %c0_i32 = arith.constant 0 : i32
    %c0_i32_0 = arith.constant 0 : i32
    return %c0_i32 : i32
  }
  func.func @transform_4(%arg0: i32) -> (i32, i32) {
    %c0_i32 = arith.constant 0 : i32
    %c0_i32_0 = arith.constant 0 : i32
    %c0_i32_1 = arith.constant 0 : i32
    return %c0_i32, %c0_i32_0 : i32, i32
  }
  func.func @transform_5(%arg0: i32) -> (i32, i32) {
    %c0_i32 = arith.constant 0 : i32
    %c0_i32_0 = arith.constant 0 : i32
    return %c0_i32, %arg0 : i32, i32
  }
  func.func @transform_6(%arg0: i32) -> (i32, i32) {
    %c0_i32 = arith.constant 0 : i32
    %c0_i32_0 = arith.constant 0 : i32
    %c0_i32_1 = arith.constant 0 : i32
    return %c0_i32, %c0_i32_0 : i32, i32
  }
}

</mosaic_0001>

<bundles_post_ra>
// kernel: tpu_custom_call.1
= control target key start
LH: loop header
LB: loop body
LE: loop exit
PB: predicated region body
PF: predicated region fallthrough
CT: control target
= control target key end

     0   :  { %13 = vsyncpa [#allocation5], 0  ;;  %s595_s0 = inlined_call_operand.hbm [shape: f32[8,2,32], index: 0, kind: input, shape index: {}]   ;;  %s596_s1 = inlined_call_operand.vmem [shape: f32[1,32], index: 1, kind: input, shape index: {}]   ;;  %s597_s2 = inlined_call_operand.hbm [shape: f32[32,28], index: 2, kind: input, shape index: {}]   ;;  %s598_s3 = inlined_call_operand.<no memory space> [shape: f32[1], index: 3, kind: input, shape index: {}]   ;;  %s599_s4 = inlined_call_operand.vmem [shape: f32[1,28], index: 4, kind: input, shape index: {}]   ;;  %s600_s5 = inlined_call_operand.hbm [shape: f32[2,8], index: 5, kind: output, shape index: {0}]   ;;  %s601_s6 = inlined_call_operand.hbm [shape: f32[2,28], index: 6, kind: output, shape index: {1}]  }
   0x1   :  { %14 = vsyncpa [#allocation8], 0 }
   0x2   :  { %15 = vsyncpa [#allocation6], 0 }
   0x3   :  { %16 = vsyncpa [#allocation11], 0  ;;  %s473_s21 = smov [#allocation4]   ;;  %s377_s25 = scalar_lea.hbm %s595_s0, 256 }
   0x4   :  { %s22_s22 = sshll.u32 %s473_s21, 4  ;;  %p378_p0 = scmp.ne.s32.totalorder %s595_s0, %s377_s25  ;;  %s23_s22 = int_to_ptr.vmem [resolvable:$true] %s22_s22 }
   0x5   :  { %p381_p1 = scmp.lt.u32.totalorder %s377_s25, %s595_s0 }
   0x7   :  { %p383_p2 = pnand %p381_p1, %p378_p0 }
   0x9   :  { %386 = shalt.err (!%p383_p2)
}
   0xa   :  { %s387_s30 = scalar_lea.vmem %s23_s22, 256  ;;  %p392_p4 = scmp.lt.s32.totalorder %s23_s22, %s23_s22 }
   0xb   :  { %p388_p3 = scmp.ne.s32.totalorder %s23_s22, %s387_s30  ;;  %p393_p5 = scmp.lt.s32.totalorder %s387_s30, %s387_s30 }
   0xd   :  { %p394_p6 = por %p393_p5, %p392_p4 }
   0xf   :  { %p395_p7 = pnand %p394_p6, %p388_p3 }
  0x11   :  { %398 = shalt.err (!%p395_p7)
}
  0x12   :  { %s474_s7 = smov 32   ;;  %s475_s8 = smov 2  }
  0x13   :  { %28 = dma.hbm_to_vmem [thread:$0]  %s595_s0, 256, %s23_s22, [#allocation5], %s474_s7, %s474_s7, %s475_s8  }
  0x14   :  { %s476_s11 = smov [#allocation7]   ;;  %s399_s15 = scalar_lea.hbm %s597_s2, 512 }
  0x15   :  { %s36_s12 = sshll.u32 %s476_s11, 4  ;;  %p400_p8 = scmp.ne.s32.totalorder %s597_s2, %s399_s15  ;;  %s37_s12 = int_to_ptr.vmem [resolvable:$true] %s36_s12 }
  0x16   :  { %p403_p9 = scmp.lt.u32.totalorder %s399_s15, %s597_s2 }
  0x18   :  { %p405_p10 = pnand %p403_p9, %p400_p8 }
  0x1a   :  { %408 = shalt.err (!%p405_p10)
}
  0x1b   :  { %s409_s20 = scalar_lea.vmem %s37_s12, 512  ;;  %p414_p12 = scmp.lt.s32.totalorder %s37_s12, %s37_s12 }
  0x1c   :  { %p410_p11 = scmp.ne.s32.totalorder %s37_s12, %s409_s20  ;;  %p415_p13 = scmp.lt.s32.totalorder %s409_s20, %s409_s20 }
  0x1e   :  { %p416_p0 = por %p415_p13, %p414_p12 }
  0x20   :  { %p417_p1 = pnand %p416_p0, %p410_p11 }
  0x22   :  { %420 = shalt.err (!%p417_p1)
}
  0x23   :  { %s477_s0 = smov 128   ;;  %s478_s21 = smov 8  }
  0x24   :  { %42 = dma.hbm_to_vmem [thread:$0]  %s597_s2, 512, %s37_s12, [#allocation8], %s477_s0, %s477_s0, %s478_s21  }
  0x25   :  { %465 = dma.done.wait [#allocation5], 256  }
  0x26   :  { %466 = vsyncadd [#allocation5], 4294967040 }
  0x27   :  { %467 = dma.done.wait [#allocation8], 512  }
  0x28   :  { %468 = vsyncadd [#allocation8], 4294966784  ;;  %vm57_vm0 = vcmask 254976   ;;  %v479_v0 = vmov -inf   ;;  %v480_v1 = vmov 0.0|0.0   ;;  %vm481_vm1 = vmmov 0  }
  0x29   :  { %58 = vst.msk [vmem:[#allocation2] sm:$0x3] %vm57_vm0, %v479_v0  ;;  %359 = vmatprep.subr.bf16.mxu0 %v480_v1  ;;  %v482_v2 = vmov 0.0   ;;  %v59_v3 = vld [vmem:[#allocation4] sm:$0x3]  ;;  %v223_v25 = vld [vmem:[#allocation7] sm:$0xff]  ;;  %v115_v52 = vlaneseq }
  0x2a   :  { %356 = vmatprep.mubr.msk.f32.mxu0 %vm481_vm1, %v482_v2  ;;  %v340_v4 = vld [vmem:[%s596_s1] ss:$0 sm:$0xff]  ;;  %v61_v5 = vld [vmem:[#allocation4 + $0x4] sm:$0x3]  ;;  %v202_v7 = vsel %vm57_vm0, %v59_v3, -inf  ;;  %v226_v35 = vld [vmem:[#allocation7 + $0x18] sm:$0xff] }
  0x2b   :  { %v74_v6 = vmul.f32 %v340_v4, %v59_v3  ;;  %v76_v8 = vmul.f32 %v340_v4, %v61_v5  ;;  %v60_v9 = vld [vmem:[#allocation4 + $0x2] sm:$0x3]  ;;  %v62_v10 = vld [vmem:[#allocation4 + $0x6] sm:$0x3]  ;;  %v204_v11 = vsel %vm57_vm0, %v61_v5, -inf  ;;  %v224_v30 = vld [vmem:[#allocation7 + $0x8] sm:$0xff] }
  0x2c   :  { %v75_v12 = vmul.f32 %v340_v4, %v60_v9  ;;  %v77_v13 = vmul.f32 %v340_v4, %v62_v10  ;;  %v63_v14 = vld [vmem:[#allocation4 + $0x8] sm:$0x3]  ;;  %v64_v15 = vld [vmem:[#allocation4 + $0xa] sm:$0x3]  ;;  %v203_v18 = vsel %vm57_vm0, %v60_v9, -inf  ;;  %v205_v21 = vsel %vm57_vm0, %v62_v10, -inf }
  0x2d   :  { %v83_v16 = vsel %vm57_vm0, %v74_v6, 0.0  ;;  %v89_v17 = vsel %vm57_vm0, %v76_v8, 0.0  ;;  %v206_v19 = vsel %vm57_vm0, %v63_v14, -inf  ;;  %v78_v22 = vmul.f32 %v340_v4, %v63_v14  ;;  %v65_v24 = vld [vmem:[#allocation4 + $0xc] sm:$0x3]  ;;  %v225_v34 = vld [vmem:[#allocation7 + $0x10] sm:$0xff] }
  0x2e   :  { %84 = vadd.xlane.f32.xlu0 %v83_v16  ;;  %90 = vadd.xlane.f32.xlu1 %v89_v17  ;;  %v86_v20 = vsel %vm57_vm0, %v75_v12, 0.0  ;;  %v207_v23 = vmax.f32 %v202_v7, %v206_v19  ;;  %v92_v26 = vsel %vm57_vm0, %v77_v13, 0.0  ;;  %v79_v27 = vmul.f32 %v340_v4, %v64_v15  ;;  %v66_v33 = vld [vmem:[#allocation4 + $0xe] sm:$0x3]  ;;  %s483_s26 = smov [#allocation10]  }
  0x2f   :  { %v208_v28 = vsel %vm57_vm0, %v64_v15, -inf  ;;  %v210_v29 = vsel %vm57_vm0, %v65_v24, -inf  ;;  %v212_v36 = vsel %vm57_vm0, %v66_v33, -inf  ;;  %v360_v37 = vpack.c.bf16 %v224_v30, %v223_v25  ;;  %v341_v15 = vld [vmem:[%s599_s4] ss:$0 sm:$0xff]  ;;  %s326_s27 = sshll.u32 %s483_s26, 4  ;;  %s327_s27 = int_to_ptr.vmem [resolvable:$true] %s326_s27 }
  0x30   :  { %v209_v31 = vmax.f32 %v203_v18, %v208_v28  ;;  %v211_v32 = vmax.f32 %v204_v11, %v210_v29  ;;  %v95_v38 = vsel %vm57_vm0, %v78_v22, 0.0  ;;  %v213_v40 = vmax.f32 %v205_v21, %v212_v36  ;;  %v201_v46 = vld [vmem:[#allocation2] sm:$0x3]  ;;  %s421_s28 = scalar_lea.vmem %s327_s27, 32  ;;  %p426_p3 = scmp.lt.s32.totalorder %s327_s27, %s327_s27 }
  0x31   :  { %v98_v41 = vsel %vm57_vm0, %v79_v27, 0.0  ;;  %v80_v42 = vmul.f32 %v340_v4, %v65_v24  ;;  %v81_v43 = vmul.f32 %v340_v4, %v66_v33  ;;  %361 = vmatpush3.bf16.msra.mxu0 %v360_v37  ;;  %v363_v44 = vpack.c.bf16 %v226_v35, %v225_v34  ;;  %p422_p2 = scmp.ne.s32.totalorder %s327_s27, %s421_s28  ;;  %p427_p4 = scmp.lt.s32.totalorder %s421_s28, %s421_s28 }
  0x32   :  { %87 = vadd.xlane.f32.xlu0 %v86_v20  ;;  %93 = vadd.xlane.f32.xlu1 %v92_v26  ;;  %v214_v39 = vmax.f32 %v207_v23, %v209_v31  ;;  %v215_v45 = vmax.f32 %v211_v32, %v213_v40  ;;  %vm234_vm2 = vcmask 261120   ;;  %v116_v53 = vand.u32 127, %v115_v52 }
  0x33   :  { %362 = vmatprep.subr.bf16.mxu0 %v480_v1  ;;  %v101_v48 = vsel %vm57_vm0, %v80_v42, 0.0  ;;  %v104_v49 = vsel %vm57_vm0, %v81_v43, 0.0  ;;  %v118_v54 = vshrl.u32 %v115_v52, 7  ;;  %vm149_vm3 = vcmask 1041409   ;;  %p428_p5 = por %p427_p4, %p426_p3 }
  0x34   :  { %v216_v47 = vmax.f32 %v214_v39, %v215_v45  ;;  %vm151_vm4 = vcmask 1042434   ;;  %vm153_vm5 = vcmask 1043459   ;;  %vm155_vm6 = vcmask 1044484  }
  0x35   :  { %364 = vmatpush3.bf16.msra.mxu0 %v363_v44  ;;  %v119_v57 = vsub.s32 %v116_v53, %v118_v54  ;;  %vm157_vm7 = vcmask 1045509   ;;  %vm159_vm8 = vcmask 1046534   ;;  %vm161_vm9 = vcmask 1047559   ;;  %p429_p6 = pnand %p428_p5, %p422_p2 }
  0x36   :  { %96 = vadd.xlane.f32.xlu0 %v95_v38  ;;  %99 = vadd.xlane.f32.xlu1 %v98_v41  ;;  %v217_v50 = vmax.f32 %v201_v46, %v216_v47  ;;  %vm308_vm10 = vcmask 222208  }
  0x38   :  { %218 = vst.msk [vmem:[#allocation2] sm:$0x3] %vm57_vm0, %v217_v50 }
  0x3a   :  { %102 = vadd.xlane.f32.xlu0 %v101_v48  ;;  %105 = vadd.xlane.f32.xlu1 %v104_v49 }
  0x3f   :  { %v222_v51 = vld [vmem:[#allocation2] sm:$0x3] }
  0x40   :  { %357 = vmatmul.mubr.msk.f32.vlgmr.msra.gmra.mrb[0].mxu0 %vm234_vm2, %v222_v51 }
  0xbb   :  { %v85_v55 = vpop.xlane.xlu0 %84  ;;  %v91_v56 = vpop.xlane.xlu1 %90 }
  0xbc   :  { %v120_v60 = vrot.slane %v85_v55, %v119_v57  ;;  %v128_v63 = vrot.slane %v91_v56, %v119_v57 }
  0xbf   :  { %v88_v58 = vpop.xlane.xlu0 %87  ;;  %v94_v59 = vpop.xlane.xlu1 %93 }
  0xc0   :  { %v124_v61 = vrot.slane %v88_v58, %v119_v57  ;;  %v132_v62 = vrot.slane %v94_v59, %v119_v57 }
  0xc2   :  { %v150_v0 = vsel %vm149_vm3, %v124_v61, %v120_v60 }
  0xc3   :  { %v152_v1 = vsel %vm151_vm4, %v128_v63, %v150_v0  ;;  %v97_v2 = vpop.xlane.xlu0 %96  ;;  %v100_v3 = vpop.xlane.xlu1 %99 }
  0xc4   :  { %v154_v4 = vsel %vm153_vm5, %v132_v62, %v152_v1  ;;  %v136_v5 = vrot.slane %v97_v2, %v119_v57  ;;  %v140_v6 = vrot.slane %v100_v3, %v119_v57 }
  0xc6   :  { %v156_v7 = vsel %vm155_vm6, %v136_v5, %v154_v4 }
  0xc7   :  { %v103_v8 = vpop.xlane.xlu0 %102  ;;  %v106_v9 = vpop.xlane.xlu1 %105  ;;  %v158_v12 = vsel %vm157_vm7, %v140_v6, %v156_v7 }
  0xc8   :  { %v144_v10 = vrot.slane %v103_v8, %v119_v57  ;;  %v148_v11 = vrot.slane %v106_v9, %v119_v57 }
  0xca   :  { %v160_v13 = vsel %vm159_vm8, %v144_v10, %v158_v12 }
  0xcb   :  { %v162_v14 = vsel %vm161_vm9, %v148_v11, %v160_v13 }
  0xcc   :  { %164 = vxpose.xlu0.b32.start.end [1/1] (short) (narrow) %v162_v14, 8 }
 0x113   :  { %v304_v16 = vpop.f32.mrb[0].mxu0 }
 0x114   :  { %v305_v17 = vadd.f32 %v341_v15, %v304_v16  ;;  %v358_v18 = vpop.f32.mrb[1].mxu0 }
 0x116   :  { %309 = vst.msk [vmem:[#allocation10] sm:$0x3] %vm308_vm10, %v305_v17 }
 0x117   :  { %432 = shalt.err (!%p429_p6)
}
 0x118   :  { %s433_s7 = scalar_lea.hbm %s601_s6, 32 }
 0x119   :  { %p434_p7 = scmp.ne.s32.totalorder %s601_s6, %s433_s7  ;;  %p437_p8 = scmp.lt.u32.totalorder %s433_s7, %s601_s6 }
 0x11b   :  { %p439_p9 = pnand %p437_p8, %p434_p7 }
 0x11d   :  { %442 = shalt.err (!%p439_p9)
}
 0x11e   :  { %329 = dma.vmem_to_hbm [thread:$0]  %s327_s27, 32, %s601_s6, [#allocation11]   ;;  %v197_v19 = vstv %s598_s3  ;;  %vm199_vm11 = vcmask 58368  }
 0x11f   :  { %s484_s15 = smov [#allocation9]  }
 0x120   :  { %s316_s16 = sshll.u32 %s484_s15, 4  ;;  %s317_s16 = int_to_ptr.vmem [resolvable:$true] %s316_s16 }
 0x121   :  { %s443_s17 = scalar_lea.vmem %s317_s16, 32  ;;  %p448_p11 = scmp.lt.s32.totalorder %s317_s16, %s317_s16 }
 0x122   :  { %p444_p10 = scmp.ne.s32.totalorder %s317_s16, %s443_s17  ;;  %p449_p12 = scmp.lt.s32.totalorder %s443_s17, %s443_s17 }
 0x124   :  { %p450_p13 = por %p449_p12, %p448_p11 }
 0x126   :  { %p451_p0 = pnand %p450_p13, %p444_p10 }
 0x14c   :  { %v180_v20 = vpop.trf.xlu0 }
 0x14d   :  { %v198_v21 = vadd.f32 %v197_v19, %v180_v20 }
 0x14f   :  { %200 = vst.msk [vmem:[#allocation9] sm:$0x3] %vm199_vm11, %v198_v21 }
 0x150   :  { %454 = shalt.err (!%p451_p0)
}
 0x151   :  { %s455_s19 = scalar_lea.hbm %s600_s5, 32 }
 0x152   :  { %p456_p1 = scmp.ne.s32.totalorder %s600_s5, %s455_s19  ;;  %p459_p2 = scmp.lt.u32.totalorder %s455_s19, %s600_s5 }
 0x154   :  { %p461_p3 = pnand %p459_p2, %p456_p1 }
 0x156   :  { %464 = shalt.err (!%p461_p3)
}
 0x157   :  { %319 = dma.vmem_to_hbm [thread:$0]  %s317_s16, 32, %s600_s5, [#allocation6]  }
 0x158   :  { %469 = dma.done.wait [#allocation6], 32  }
 0x159   :  { %470 = vsyncadd [#allocation6], 4294967264 }
 0x15a   :  { %471 = dma.done.wait [#allocation11], 32  }
 0x15b   :  { %472 = vsyncadd [#allocation11], 4294967264 }
 0x15c   :  { %336 = vsyncpa [#allocation5], 1 }
 0x15d   :  { %337 = vsyncpa [#allocation8], 1 }
 0x15e   :  { %338 = vsyncpa [#allocation6], 1 }
 0x15f   :  { %339 = vsyncpa [#allocation11], 1 }

</bundles_post_ra>
